<compile_context>
chip_gen: v7x
topology: tpu7x:2x2x1
jax: 0.10.0
libtpu: 0.0.40
codegen_flags: <defaults>
</compile_context>

<pallas_src>
import jax
import jax.numpy as jnp
from jax import lax
from jax.experimental import pallas as pl
from jax.experimental.pallas import tpu as pltpu


_INV_SQRT2 = 0.70710678118654752440


def _gelu_exact(x):
    # PyTorch nn.GELU() default is the exact erf formulation (keep parity).
    return 0.5 * x * (1.0 + lax.erf(x * _INV_SQRT2))


def projection_head_kernel(x_ref, w1_ref, b1_ref, w2_ref, b2_ref,
                           gamma_ref, beta_ref, o_ref):
    # ---- projection = Linear(E, P); f32 accumulation on the MXU ----
    x = x_ref[...]                                                     # [TM, E]
    projected = jnp.dot(x, w1_ref[...],
                        preferred_element_type=jnp.float32)            # [TM, P] f32
    projected = projected + b1_ref[...].astype(jnp.float32)

    # ---- GELU (exact erf, matching nn.GELU()); EUP handles erf ----
    h = _gelu_exact(projected)

    # ---- fc = Linear(P, P); feed the MXU in the weight dtype, accumulate f32 ----
    h = jnp.dot(h.astype(w2_ref.dtype), w2_ref[...],
                preferred_element_type=jnp.float32)                    # [TM, P] f32
    h = h + b2_ref[...].astype(jnp.float32)

    # ---- Dropout: identity at inference time ----
    # TODO(synk): training-mode dropout (pltpu.prng_random_bits mask) not emitted here.

    # ---- Residual add with the pre-GELU projection (as in the PyTorch module) ----
    h = h + projected

    # ---- LayerNorm over last dim (eps = 1e-5), biased variance like torch ----
    # One-pass moments: sum(h) and sum(h*h) are independent row reductions, so the
    # two XLU reductions can overlap; everything stays in f32.
    mean = jnp.mean(h, axis=-1, keepdims=True)
    meansq = jnp.mean(h * h, axis=-1, keepdims=True)
    var = jnp.maximum(meansq - mean * mean, 0.0)
    inv = lax.rsqrt(var + 1e-5)
    y = (h - mean) * inv
    y = y * gamma_ref[...].astype(jnp.float32) + beta_ref[...].astype(jnp.float32)

    o_ref[...] = y.astype(o_ref.dtype)


def projection_head(x, w1, b1, w2, b2, gamma, beta, *, block_rows=128):
    """x: [B, E]; w1: [E, P]; w2: [P, P]; b1/b2/gamma/beta: [1, P]."""
    B, E = x.shape
    P = w1.shape[1]

    # Batch tile: MXU-friendly (up to 128 rows), multiple of 8 (f32 sublane) unless
    # it is the full batch extent (full-array-dim blocks are always legal).
    tm = min(block_rows, B)
    if tm < B:
        tm = max(8, (tm // 8) * 8)
    grid = (pl.cdiv(B, tm),)

    itemsize = jnp.dtype(x.dtype).itemsize
    # VMEM budget: resident weights/params + double-buffered x/out tiles + headroom.
    # Capped so it also fits comfortably inside v7x's 64 MiB per-TC VMEM.
    resident = (E * P + P * P + 4 * P) * itemsize
    streamed = 2 * tm * E * itemsize + 2 * tm * P * itemsize
    vmem_bytes = min(max(resident + streamed + (8 << 20), 16 << 20), 48 << 20)

    cost = pl.CostEstimate(
        flops=2 * B * E * P + 2 * B * P * P + 8 * B * P,
        transcendentals=2 * B * P,  # ~erf + rsqrt per output element
        bytes_accessed=(B * E + 2 * B * P + E * P + P * P + 4 * P) * itemsize,
    )

    grid_spec = pltpu.PrefetchScalarGridSpec(
        num_scalar_prefetch=0,
        grid=grid,
        in_specs=[
            pl.BlockSpec((tm, E), lambda i: (i, 0)),   # x tile (pipelined)
            pl.BlockSpec((E, P), lambda i: (0, 0)),    # w1 (VMEM-resident)
            pl.BlockSpec((1, P), lambda i: (0, 0)),    # b1
            pl.BlockSpec((P, P), lambda i: (0, 0)),    # w2 (VMEM-resident)
            pl.BlockSpec((1, P), lambda i: (0, 0)),    # b2
            pl.BlockSpec((1, P), lambda i: (0, 0)),    # layer_norm gamma
            pl.BlockSpec((1, P), lambda i: (0, 0)),    # layer_norm beta
        ],
        out_specs=pl.BlockSpec((tm, P), lambda i: (i, 0)),
    )

    return pl.pallas_call(
        projection_head_kernel,
        out_shape=jax.ShapeDtypeStruct((B, P), x.dtype),
        grid_spec=grid_spec,
        compiler_params=pltpu.CompilerParams(
            # Batch-tile axis is fully independent -> shard across TCs on megacore parts.
            dimension_semantics=("parallel",),
            vmem_limit_bytes=vmem_bytes,
        ),
        cost_estimate=cost,
    )(x, w1, b1, w2, b2, gamma, beta)


if __name__ == "__main__":
    # Small but lane-dense / MXU-friendly shapes: last dims multiples of 128,
    # batch gives a 2-step grid so the x/out tiles actually pipeline.
    B, E, P = 256, 256, 128   # batch, embedding_dim, projection_dim

    key = jax.random.PRNGKey(0)
    kx, kw1, kb1, kw2, kb2 = jax.random.split(key, 5)

    x = jax.random.normal(kx, (B, E), dtype=jnp.float32)

    # Deterministic parameter init (shapes from nn.Linear / nn.LayerNorm),
    # stored as [in, out] so the kernel computes x @ W + b.
    w1 = jax.random.normal(kw1, (E, P), dtype=jnp.float32) * (1.0 / jnp.sqrt(E))
    b1 = jax.random.normal(kb1, (1, P), dtype=jnp.float32) * 0.01
    w2 = jax.random.normal(kw2, (P, P), dtype=jnp.float32) * (1.0 / jnp.sqrt(P))
    b2 = jax.random.normal(kb2, (1, P), dtype=jnp.float32) * 0.01
    gamma = jnp.ones((1, P), dtype=jnp.float32)   # LayerNorm weight init
    beta = jnp.zeros((1, P), dtype=jnp.float32)   # LayerNorm bias init

    out = projection_head(x, w1, b1, w2, b2, gamma, beta)
    jax.block_until_ready(out)

    # Pure-JAX reference (exact-erf GELU, identity dropout, pre-GELU residual, eps=1e-5).
    projected = x @ w1 + b1
    h = 0.5 * projected * (1.0 + lax.erf(projected / jnp.sqrt(2.0)))
    h = h @ w2 + b2
    h = h + projected
    mean = h.mean(-1, keepdims=True)
    var = ((h - mean) ** 2).mean(-1, keepdims=True)
    ref = (h - mean) / jnp.sqrt(var + 1e-5) * gamma + beta

    max_diff = jnp.max(jnp.abs(out - ref))
    assert jnp.allclose(out, ref, atol=1e-4, rtol=1e-5), f"max abs diff {max_diff}"
    print("KERNEL_OK")
</pallas_src>

<mosaic_0001>
module attributes {stable_mosaic.version = 11 : i64} {
  func.func @projection_head_kernel(%arg0: i32, %arg1: memref<128x256xf32, #tpu.memory_space<vmem>>, %arg2: memref<256x128xf32, #tpu.memory_space<vmem>>, %arg3: memref<1x128xf32, #tpu.memory_space<vmem>>, %arg4: memref<128x128xf32, #tpu.memory_space<vmem>>, %arg5: memref<1x128xf32, #tpu.memory_space<vmem>>, %arg6: memref<1x128xf32, #tpu.memory_space<vmem>>, %arg7: memref<1x128xf32, #tpu.memory_space<vmem>>, %arg8: memref<128x128xf32, #tpu.memory_space<vmem>>) attributes {dimension_semantics = [#tpu.dimension_semantics<parallel>], iteration_bounds = array<i64: 2>, scalar_prefetch = 0 : i64, scratch_operands = 0 : i64, tpu.core_type = #tpu.core_type<tc>, window_params = [{transform_indices = @transform_0, window_bounds = array<i64: 128, 256>}, {pipeline_mode = #tpu.pipeline_mode<synchronous>, transform_indices = @transform_1, window_bounds = array<i64: 256, 128>}, {pipeline_mode = #tpu.pipeline_mode<synchronous>, transform_indices = @transform_2, window_bounds = array<i64: 1, 128>}, {pipeline_mode = #tpu.pipeline_mode<synchronous>, transform_indices = @transform_3, window_bounds = array<i64: 128, 128>}, {pipeline_mode = #tpu.pipeline_mode<synchronous>, transform_indices = @transform_4, window_bounds = array<i64: 1, 128>}, {pipeline_mode = #tpu.pipeline_mode<synchronous>, transform_indices = @transform_5, window_bounds = array<i64: 1, 128>}, {pipeline_mode = #tpu.pipeline_mode<synchronous>, transform_indices = @transform_6, window_bounds = array<i64: 1, 128>}, {transform_indices = @transform_7, window_bounds = array<i64: 128, 128>}]} {
    %c0 = arith.constant 0 : index
    %c0_0 = arith.constant 0 : index
    %0 = vector.load %arg1[%c0, %c0_0] : memref<128x256xf32, #tpu.memory_space<vmem>>, vector<128x256xf32>
    %c0_1 = arith.constant 0 : index
    %c0_2 = arith.constant 0 : index
    %1 = vector.load %arg2[%c0_1, %c0_2] : memref<256x128xf32, #tpu.memory_space<vmem>>, vector<256x128xf32>
    %cst = arith.constant dense<0.000000e+00> : vector<128x128xf32>
    %2 = tpu.matmul %0, %1, %cst {dimension_numbers = #tpu.dot_dimension_numbers<[1], [0], [0], [1], [0, 0, 1, 1], [], []>} : vector<128x256xf32>, vector<256x128xf32>, vector<128x128xf32> -> vector<128x128xf32>
    %c0_3 = arith.constant 0 : index
    %c0_4 = arith.constant 0 : index
    %3 = vector.load %arg3[%c0_3, %c0_4] : memref<1x128xf32, #tpu.memory_space<vmem>>, vector<1x128xf32>
    %4 = vector.broadcast %3 : vector<1x128xf32> to vector<128x128xf32>
    %5 = arith.addf %2, %4 : vector<128x128xf32>
    %cst_5 = arith.constant 5.000000e-01 : f32
    %6 = vector.broadcast %cst_5 : f32 to vector<128x128xf32>
    %7 = arith.mulf %6, %5 : vector<128x128xf32>
    %cst_6 = arith.constant 0.707106769 : f32
    %8 = vector.broadcast %cst_6 : f32 to vector<128x128xf32>
    %9 = arith.mulf %5, %8 : vector<128x128xf32>
    %10 = math.erf %9 : vector<128x128xf32>
    %cst_7 = arith.constant 1.000000e+00 : f32
    %11 = vector.broadcast %cst_7 : f32 to vector<128x128xf32>
    %12 = arith.addf %11, %10 : vector<128x128xf32>
    %13 = arith.mulf %7, %12 : vector<128x128xf32>
    %c0_8 = arith.constant 0 : index
    %c0_9 = arith.constant 0 : index
    %14 = vector.load %arg4[%c0_8, %c0_9] : memref<128x128xf32, #tpu.memory_space<vmem>>, vector<128x128xf32>
    %cst_10 = arith.constant dense<0.000000e+00> : vector<128x128xf32>
    %15 = tpu.matmul %13, %14, %cst_10 {dimension_numbers = #tpu.dot_dimension_numbers<[1], [0], [0], [1], [0, 0, 1, 1], [], []>} : vector<128x128xf32>, vector<128x128xf32>, vector<128x128xf32> -> vector<128x128xf32>
    %c0_11 = arith.constant 0 : index
    %c0_12 = arith.constant 0 : index
    %16 = vector.load %arg5[%c0_11, %c0_12] : memref<1x128xf32, #tpu.memory_space<vmem>>, vector<1x128xf32>
    %17 = vector.broadcast %16 : vector<1x128xf32> to vector<128x128xf32>
    %18 = arith.addf %15, %17 : vector<128x128xf32>
    %19 = arith.addf %18, %5 : vector<128x128xf32>
    %cst_13 = arith.constant dense<0.000000e+00> : vector<128xf32>
    %20 = vector.multi_reduction <add>, %19, %cst_13 [1] : vector<128x128xf32> to vector<128xf32>
    %21 = vector.shape_cast %20 : vector<128xf32> to vector<128x1xf32>
    %cst_14 = arith.constant 1.280000e+02 : f32
    %22 = vector.broadcast %cst_14 : f32 to vector<128x1xf32>
    %23 = arith.divf %21, %22 : vector<128x1xf32>
    %24 = arith.mulf %19, %19 : vector<128x128xf32>
    %cst_15 = arith.constant dense<0.000000e+00> : vector<128xf32>
    %25 = vector.multi_reduction <add>, %24, %cst_15 [1] : vector<128x128xf32> to vector<128xf32>
    %26 = vector.shape_cast %25 : vector<128xf32> to vector<128x1xf32>
    %cst_16 = arith.constant 1.280000e+02 : f32
    %27 = vector.broadcast %cst_16 : f32 to vector<128x1xf32>
    %28 = arith.divf %26, %27 : vector<128x1xf32>
    %29 = arith.mulf %23, %23 : vector<128x1xf32>
    %30 = arith.subf %28, %29 : vector<128x1xf32>
    %cst_17 = arith.constant 0.000000e+00 : f32
    %31 = vector.broadcast %cst_17 : f32 to vector<128x1xf32>
    %32 = arith.maximumf %30, %31 : vector<128x1xf32>
    %cst_18 = arith.constant 9.99999974E-6 : f32
    %33 = vector.broadcast %cst_18 : f32 to vector<128x1xf32>
    %34 = arith.addf %32, %33 : vector<128x1xf32>
    %35 = math.rsqrt %34 : vector<128x1xf32>
    %36 = vector.broadcast %23 : vector<128x1xf32> to vector<128x128xf32>
    %37 = arith.subf %19, %36 : vector<128x128xf32>
    %38 = vector.broadcast %35 : vector<128x1xf32> to vector<128x128xf32>
    %39 = arith.mulf %37, %38 : vector<128x128xf32>
    %c0_19 = arith.constant 0 : index
    %c0_20 = arith.constant 0 : index
    %40 = vector.load %arg6[%c0_19, %c0_20] : memref<1x128xf32, #tpu.memory_space<vmem>>, vector<1x128xf32>
    %41 = vector.broadcast %40 : vector<1x128xf32> to vector<128x128xf32>
    %42 = arith.mulf %39, %41 : vector<128x128xf32>
    %c0_21 = arith.constant 0 : index
    %c0_22 = arith.constant 0 : index
    %43 = vector.load %arg7[%c0_21, %c0_22] : memref<1x128xf32, #tpu.memory_space<vmem>>, vector<1x128xf32>
    %44 = vector.broadcast %43 : vector<1x128xf32> to vector<128x128xf32>
    %45 = arith.addf %42, %44 : vector<128x128xf32>
    %c0_23 = arith.constant 0 : index
    %c0_24 = arith.constant 0 : index
    %46 = vector.load %arg8[%c0_23, %c0_24] : memref<128x128xf32, #tpu.memory_space<vmem>>, vector<128x128xf32>
    tpu.vector_store %arg8[%c0_23, %c0_24], %45 {strides = array<i32>} : memref<128x128xf32, #tpu.memory_space<vmem>>, vector<128x128xf32>,
    return
  }
  func.func @transform_0(%arg0: i32) -> (i32, i32) {
    %c0_i32 = arith.constant 0 : i32
    %c0_i32_0 = arith.constant 0 : i32
    return %arg0, %c0_i32 : i32, i32
  }
  func.func @transform_1(%arg0: i32) -> (i32, i32) {
    %c0_i32 = arith.constant 0 : i32
    %c0_i32_0 = arith.constant 0 : i32
    %c0_i32_1 = arith.constant 0 : i32
    return %c0_i32, %c0_i32_0 : i32, i32
  }
  func.func @transform_2(%arg0: i32) -> (i32, i32) {
    %c0_i32 = arith.constant 0 : i32
    %c0_i32_0 = arith.constant 0 : i32
    %c0_i32_1 = arith.constant 0 : i32
    return %c0_i32, %c0_i32_0 : i32, i32
  }
  func.func @transform_3(%arg0: i32) -> (i32, i32) {
    %c0_i32 = arith.constant 0 : i32
    %c0_i32_0 = arith.constant 0 : i32
    %c0_i32_1 = arith.constant 0 : i32
    return %c0_i32, %c0_i32_0 : i32, i32
  }
  func.func @transform_4(%arg0: i32) -> (i32, i32) {
    %c0_i32 = arith.constant 0 : i32
    %c0_i32_0 = arith.constant 0 : i32
    %c0_i32_1 = arith.constant 0 : i32
    return %c0_i32, %c0_i32_0 : i32, i32
  }
  func.func @transform_5(%arg0: i32) -> (i32, i32) {
    %c0_i32 = arith.constant 0 : i32
    %c0_i32_0 = arith.constant 0 : i32
    %c0_i32_1 = arith.constant 0 : i32
    return %c0_i32, %c0_i32_0 : i32, i32
  }
  func.func @transform_6(%arg0: i32) -> (i32, i32) {
    %c0_i32 = arith.constant 0 : i32
    %c0_i32_0 = arith.constant 0 : i32
    %c0_i32_1 = arith.constant 0 : i32
    return %c0_i32, %c0_i32_0 : i32, i32
  }
  func.func @transform_7(%arg0: i32) -> (i32, i32) {
    %c0_i32 = arith.constant 0 : i32
    %c0_i32_0 = arith.constant 0 : i32
    return %arg0, %c0_i32 : i32, i32
  }
}

</mosaic_0001>

<bundles_post_ra>
// kernel: tpu_custom_call.1
= control target key start
LH: loop header
LB: loop body
LE: loop exit
PB: predicated region body
PF: predicated region fallthrough
CT: control target
= control target key end

     0   :  { %12 = vsyncpa [#allocation3], 0  ;;  %s2413_s0 = inlined_call_operand.hbm [shape: f32[256,256], index: 0, kind: input, shape index: {}]   ;;  %s2414_s1 = inlined_call_operand.hbm [shape: f32[256,128], index: 1, kind: input, shape index: {}]   ;;  %s2415_s2 = inlined_call_operand.vmem [shape: f32[1,128], index: 2, kind: input, shape index: {}]   ;;  %s2416_s3 = inlined_call_operand.hbm [shape: f32[128,128], index: 3, kind: input, shape index: {}]   ;;  %s2417_s4 = inlined_call_operand.vmem [shape: f32[1,128], index: 4, kind: input, shape index: {}]   ;;  %s2418_s5 = inlined_call_operand.vmem [shape: f32[1,128], index: 5, kind: input, shape index: {}]   ;;  %s2419_s6 = inlined_call_operand.vmem [shape: f32[1,128], index: 6, kind: input, shape index: {}]   ;;  %s2420_s7 = inlined_call_operand.hbm [shape: f32[256,128], index: 7, kind: output, shape index: {}]  }
   0x1   :  { %14 = vsyncpa [#allocation3 + $0x1], 0 }
   0x2   :  { %15 = vsyncpa [#allocation6], 0 }
   0x3   :  { %16 = vsyncpa [#allocation4], 0 }
   0x4   :  { %18 = vsyncpa [#allocation4 + $0x1], 0  ;;  %s1805_s24 = smov 0   ;;  %s1807_s25 = smov 0  }
   0x5   :  { %s1809_s26 = smov 0   ;;  %s1811_s27 = smov 0  }
   0x6 LB: > { %s1826_s28 = sadd.s32 4294967295, %s1753_s27   ;;  %s1202_s29 = sadd.s32 4294967294, %s1753_s27   ;;  %s1753_s27 = sphi %s1811_s27, %s2440_s27   ;;  %s1749_s26 = sphi %s1809_s26, %s2439_s26   ;;  %s1745_s25 = sphi %s1807_s25, %s2438_s25   ;;  %s1741_s24 = sphi %s1805_s24, %s2437_s24  }
   0x7   : > { %p44_p0 = scmp.ne.s32.totalorder %s1745_s25, %s1741_s24  ;;  %p2421_p1 = scmp.eq.s32.totalorder %s1826_s28, 0 }
   0x8   : > { %p200_p3 = scmp.eq.s32.totalorder %s1202_s29, 1  ;;  %p1203_p5 = scmp.ge.s32.totalorder %s1753_s27, 1 }
   0x9   : > { %p1835_p4 = por %p2421_p1, %p44_p0  ;;  %p207_p7 = scmp.lt.s32.totalorder %s1753_s27, 3 }
   0xa   : > { %p1840_p6 = por %p200_p3, %p44_p0  ;;  %s1755_s10 = smov [#allocation5]  }
   0xb   : > { %s2424_s30 = scalar_select %p1835_p4, 1, 0 }
   0xc   : > { %s2425_s8 = scalar_select %p1840_p6, 1, 0 }
   0xd   : > { %p1845_p8 = pnand %p1203_p5, %p207_p7  ;;  %s219_s11 = sshll.u32 %s1755_s10, 4  ;;  %s1849_s11 = int_to_ptr.vmem [resolvable:$true] %s219_s11 }
   0xe   : > { %s1756_s13 = smov [#allocation7]   ;;  %s1597_s17 = scalar_lea.hbm %s2414_s1, 4096 }
   0xf   : > { %p1472_p9 = pneg %p1845_p8  ;;  %s235_s14 = sshll.u32 %s1756_s13, 4  ;;  %s1860_s14 = int_to_ptr.vmem [resolvable:$true] %s235_s14 }
  0x10   : > { %p1598_p12 = scmp.ne.s32.totalorder %s2414_s1, %s1597_s17  ;;  %p1604_p5 = scmp.lt.u32.totalorder %s1597_s17, %s2414_s1 }
  0x11   : > { %p1856_p11 = pnand %p1472_p9, %p2421_p1 }
  0x13   : > { %p1599_p13 = pneg %p1856_p11 }
  0x15   : > { %p1600_p0 = pnand %p1599_p13, %p1598_p12 }
  0x17   : > { %p1601_p3 = pneg %p1600_p0 }
  0x19   : > { %p1606_p7 = pnand %p1604_p5, %p1601_p3 }
  0x1b   : > { %1609 = shalt.err (!%p1606_p7)
}
  0x1c   : > { %s1610_s22 = scalar_lea.vmem %s1849_s11, 4096  ;;  %p1618_p2 = scmp.lt.s32.totalorder %s1849_s11, %s1849_s11 }
  0x1d   : > { %p1611_p9 = scmp.ne.s32.totalorder %s1849_s11, %s1610_s22  ;;  %p1619_p12 = scmp.lt.s32.totalorder %s1610_s22, %s1610_s22 }
  0x1f   : > { %p1613_p10 = pnand %p1611_p9, %p1599_p13  ;;  %p1620_p0 = por %p1619_p12, %p1618_p2 }
  0x21   : > { %p1614_p1 = pneg %p1613_p10 }
  0x23   : > { %p1621_p6 = pnand %p1620_p0, %p1614_p1 }
  0x25   : > { %1624 = shalt.err (!%p1621_p6)
}
  0x26   : > { %s1757_s23 = smov 128   ;;  %s1758_s29 = smov 8  }
  0x27   : > { %1475 = dma.hbm_to_vmem [thread:$0]  (!%p1856_p11), %s2414_s1, 4096, %s1849_s11, [#allocation6], %s1757_s23, %s1757_s23, %s1758_s29  }
  0x28   : > { %s1625_s17 = scalar_lea.hbm %s2416_s3, 2048 }
  0x29   : > { %p1626_p2 = scmp.ne.s32.totalorder %s2416_s3, %s1625_s17  ;;  %p1632_p10 = scmp.lt.u32.totalorder %s1625_s17, %s2416_s3 }
  0x2b   : > { %p1628_p1 = pnand %p1626_p2, %p1599_p13 }
  0x2d   : > { %p1629_p6 = pneg %p1628_p1 }
  0x2f   : > { %p1634_p3 = pnand %p1632_p10, %p1629_p6 }
  0x31   : > { %1637 = shalt.err (!%p1634_p3)
}
  0x32   : > { %s1638_s11 = scalar_lea.vmem %s1860_s14, 2048  ;;  %p1646_p12 = scmp.lt.s32.totalorder %s1860_s14, %s1860_s14 }
  0x33   : > { %p1639_p5 = scmp.ne.s32.totalorder %s1860_s14, %s1638_s11  ;;  %p1647_p0 = scmp.lt.s32.totalorder %s1638_s11, %s1638_s11 }
  0x35   : > { %p1641_p7 = pnand %p1639_p5, %p1599_p13  ;;  %p1648_p2 = por %p1647_p0, %p1646_p12 }
  0x37   : > { %p1642_p9 = pneg %p1641_p7 }
  0x39   : > { %p1649_p1 = pnand %p1648_p2, %p1642_p9 }
  0x3b   : > { %1652 = shalt.err (!%p1649_p1)
}
  0x3c   : > { %1478 = dma.hbm_to_vmem [thread:$0]  (!%p1856_p11), %s2416_s3, 2048, %s1860_s14, [#allocation6], %s1757_s23, %s1757_s23, %s1758_s29  }
  0x3d   : > { %s1915_s13 = sadd.s32 1, %s1753_s27   ;;  %s31_s12 = sadd.s32 1, %s1749_s26 }
  0x3e   : > { %s28_s15 = ssub.s32 %s1753_s27, %s1915_s13  ;;  %p38_p13 = scmp.ne.s32.totalorder %s1749_s26, %s1745_s25 }
  0x3f   : > { %p29_p6 = scmp.eq.s32.totalorder %s28_s15, 0  ;;  %p39_p10 = scmp.eq.s32.totalorder %s1753_s27, 0 }
  0x40   : > { %p2428_p3 = scmp.eq.s32.totalorder %s1826_s28, 1  ;;  %p1489_p7 = scmp.lt.s32.totalorder %s1753_s27, 2 }
  0x41   : > { %s1931_s17 = scalar_select %p29_p6, %s1749_s26, %s31_s12  }
  0x42   : > { %p1925_p5 = por %p2428_p3, %p38_p13  ;;  %p40_p9 = por %p39_p10, %p38_p13 }
  0x43   : > { %s258_s18 = sand.u32 1, %s1749_s26   ;;  %s1226_s14 = sshll.u32 %s1753_s27, 12 }
  0x44   : > { %s2429_s16 = scalar_select %p1925_p5, 1, 0 }
  0x45   : > { %s1207_s19 = sshll.u32 %s258_s18, 8  ;;  %s1938_s20 = scalar_lea.hbm %s2413_s0, %s1226_s14 }
  0x46   : > { %s262_s21 = scalar_lea.vmem [#allocation2], %s1207_s19  ;;  %p1942_p11 = pnand %p1489_p7, %p40_p9 }
  0x47   : > { %s270_s11 = sshll.u32 %s262_s21, 4  ;;  %s1946_s10 = scalar_lea.sflag [#allocation3], %s258_s18  ;;  %s1940_s11 = int_to_ptr.vmem [resolvable:$true] %s270_s11 }
  0x48   : > { %s1653_s12 = scalar_lea.hbm %s1938_s20, 4096  ;;  %p1655_p0 = pneg %p1942_p11 }
  0x49   : > { %p1654_p12 = scmp.ne.s32.totalorder %s1938_s20, %s1653_s12  ;;  %s1658_s14 = scalar_lea.hbm %s2413_s0, 8192 }
  0x4a   : > { %p1659_p13 = scmp.lt.u32.totalorder %s1938_s20, %s2413_s0  ;;  %p1660_p6 = scmp.lt.u32.totalorder %s1658_s14, %s1653_s12 }
  0x4b   : > { %p1656_p2 = pnand %p1655_p0, %p1654_p12  ;;  %p1662_p3 = scmp.lt.u32.totalorder %s1653_s12, %s1938_s20 }
  0x4c   : > { %p1661_p10 = por %p1660_p6, %p1659_p13 }
  0x4d   : > { %p1657_p1 = pneg %p1656_p2 }
  0x4e   : > { %p1663_p7 = por %p1662_p3, %p1661_p10 }
  0x50   : > { %p1664_p9 = pnand %p1663_p7, %p1657_p1 }
  0x52   : > { %1667 = shalt.err (!%p1664_p9)
}
  0x53   : > { %s1668_s18 = scalar_lea.vmem %s1940_s11, 4096  ;;  %s1759_s21 = smov [#allocation2]  }
  0x54   : > { %p1669_p12 = scmp.ne.s32.totalorder %s1940_s11, %s1668_s18  ;;  %s1673_s15 = sshll.u32 %s1759_s21, 4  ;;  %s1674_s15 = int_to_ptr.vmem [resolvable:$false] %s1673_s15 }
  0x55   : > { %s1675_s19 = scalar_lea.vmem %s1674_s15, 8192  ;;  %p1676_p4 = scmp.lt.s32.totalorder %s1940_s11, %s1674_s15 }
  0x56   : > { %p1671_p2 = pnand %p1669_p12, %p1655_p0  ;;  %p1677_p13 = scmp.lt.s32.totalorder %s1675_s19, %s1668_s18 }
  0x58   : > { %p1672_p5 = pneg %p1671_p2  ;;  %p1678_p6 = por %p1677_p13, %p1676_p4 }
  0x5a   : > { %p1679_p10 = pnand %p1678_p6, %p1672_p5 }
  0x5c   : > { %1682 = shalt.err (!%p1679_p10)
}
  0x5d   : > { %s1760_s12 = smov 256   ;;  %s1761_s14 = smov 16  }
  0x5e   : > { %1482 = dma.hbm_to_vmem [thread:$0]  (!%p1942_p11), %s1938_s20, 4096, %s1940_s11, %s1946_s10, %s1760_s12, %s1760_s12, %s1761_s14  }
  0x5f   : > { %282 = sbr.rel (%p1845_p8) target bundleno = 841 (0x349), region = 48  ;;  %s1977_s23 = sand.u32 (!%p1845_p8), 1, %s1745_s25  }
  0x60   : > { %s1212_s29 = sshll.u32 (!%p1845_p8), %s1977_s23, 8  ;;  %s285_s18 = scalar_lea.sflag (!%p1845_p8), [#allocation3], %s1977_s23 }
  0x61   : > { %s1981_s21 = scalar_lea.vmem (!%p1845_p8), [#allocation2], %s1212_s29  ;;  %p2431_p4 = scmp.ne.s32.totalorder (!%p1845_p8), %s2424_s30, 0 }
  0x66   : > { %1728 = dma.done.wait (%p2431_p4), %s285_s18, 4096  }
  0x67   : > { %1730 = vsyncadd (%p2431_p4), %s285_s18, 4294963200  ;;  %p2432_p5 = scmp.eq.s32.totalorder %s1826_s28, 0 }
  0x69   : > { %1732 = dma.done.wait (%p2432_p5), [#allocation6], 6144   ;;  %p2433_p8 = pmov %p2432_p5 }
  0x6a   : > { %v377_v0 = vld [vmem:[#allocation5 + $0x80] sm:$0xff]  ;;  %v378_v1 = vld [vmem:[#allocation5 + $0x88] sm:$0xff]  ;;  %v379_v5 = vld [vmem:[#allocation5 + $0x90] sm:$0xff]  ;;  %s1215_s15 = sshll.u32 %s1977_s23, 7  ;;  %s1227_s29 = sshll.u32 %s1826_s28, 11 }
  0x6b   : > { %1734 = vsyncadd (%p2433_p8), [#allocation6], 4294961152  ;;  %v361_v2 = vld [vmem:[#allocation5] sm:$0xff]  ;;  %v1396_v3 = vpack.c.bf16 %v378_v1, %v377_v0  ;;  %v362_v4 = vld [vmem:[#allocation5 + $0x8] sm:$0xff]  ;;  %s2258_s14 = scalar_lea.vmem [#allocation8], %s1215_s15  ;;  %s2365_s9 = scalar_lea.hbm %s2420_s7, %s1227_s29 }
  0x6c   : > { %v380_v6 = vld [vmem:[#allocation5 + $0x98] sm:$0xff]  ;;  %v1398_v7 = vpack.c.bf16 %v362_v4, %v361_v2  ;;  %v363_v9 = vld [vmem:[#allocation5 + $0x10] sm:$0xff]  ;;  %v381_v11 = vld [vmem:[#allocation5 + $0xa0] sm:$0xff]  ;;  %s1110_s18 = sshll.u32 %s2258_s14, 4  ;;  %s1097_s28 = scalar_lea.sflag [#allocation4], %s1977_s23  ;;  %s2367_s18 = int_to_ptr.vmem [resolvable:$true] %s1110_s18 }
  0x6d   : > { %v1400_v8 = vpack.c.bf16 %v380_v6, %v379_v5  ;;  %v364_v10 = vld [vmem:[#allocation5 + $0x18] sm:$0xff]  ;;  %1397 = vmatprep.subr.bf16.mxu0 %v1396_v3  ;;  %v382_v12 = vld [vmem:[#allocation5 + $0xa8] sm:$0xff]  ;;  %v365_v15 = vld [vmem:[#allocation5 + $0x20] sm:$0xff]  ;;  %s1683_s20 = scalar_lea.vmem %s2367_s18, 2048  ;;  %p2434_p0 = scmp.ne.s32.totalorder %s2429_s16, 0 }
  0x6e   : > { %1399 = vmatpush3.bf16.msra.mxu0 %v1398_v7  ;;  %v1402_v13 = vpack.c.bf16 %v364_v10, %v363_v9  ;;  %v1404_v14 = vpack.c.bf16 %v382_v12, %v381_v11  ;;  %v366_v16 = vld [vmem:[#allocation5 + $0x28] sm:$0xff]  ;;  %v383_v17 = vld [vmem:[#allocation5 + $0xb0] sm:$0xff]  ;;  %v384_v18 = vld [vmem:[#allocation5 + $0xb8] sm:$0xff]  ;;  %p1684_p11 = scmp.ne.s32.totalorder %s2367_s18, %s1683_s20  ;;  %s1762_s11 = smov [#allocation8]  }
  0x6f   : > { %1401 = vmatprep.subr.bf16.mxu0 %v1400_v8  ;;  %v1406_v19 = vpack.c.bf16 %v366_v16, %v365_v15  ;;  %v1408_v20 = vpack.c.bf16 %v384_v18, %v383_v17  ;;  %v367_v21 = vld [vmem:[#allocation5 + $0x30] sm:$0xff]  ;;  %v368_v22 = vld [vmem:[#allocation5 + $0x38] sm:$0xff]  ;;  %v385_v23 = vld [vmem:[#allocation5 + $0xc0] sm:$0xff]  ;;  %s1687_s22 = sshll.u32 %s1762_s11, 4  ;;  %s1688_s22 = int_to_ptr.vmem [resolvable:$false] %s1687_s22 }
  0x70   : > { %v386_v24 = vld [vmem:[#allocation5 + $0xc8] sm:$0xff]  ;;  %v1410_v26 = vpack.c.bf16 %v368_v22, %v367_v21  ;;  %v369_v28 = vld [vmem:[#allocation5 + $0x40] sm:$0xff]  ;;  %v387_v30 = vld [vmem:[#allocation5 + $0xd0] sm:$0xff]  ;;  %p1685_p1 = pnand %p1684_p11, %p2434_p0  ;;  %s1689_s10 = scalar_lea.vmem %s1688_s22, 4096 }
  0x71   : > { %v330_v25 = vld [vmem:[%s1981_s21 + $0x8] sm:$0xff]  ;;  %v1412_v27 = vpack.c.bf16 %v386_v24, %v385_v23  ;;  %v388_v31 = vld [vmem:[#allocation5 + $0xd8] sm:$0xff]  ;;  %v371_v34 = vld [vmem:[#allocation5 + $0x50] sm:$0xff]  ;;  %p1690_p7 = scmp.lt.s32.totalorder %s2367_s18, %s1688_s22  ;;  %p1691_p9 = scmp.lt.s32.totalorder %s1689_s10, %s1683_s20 }
  0x72   : > { %1403 = vmatpush3.bf16.msra.mxu0 %v1402_v13  ;;  %464 = vmatprep.mubr.f32.mxu0 %v330_v25  ;;  %v370_v29 = vld [vmem:[#allocation5 + $0x48] sm:$0xff]  ;;  %v1416_v33 = vpack.c.bf16 %v388_v31, %v387_v30  ;;  %v372_v35 = vld [vmem:[#allocation5 + $0x58] sm:$0xff]  ;;  %v389_v36 = vld [vmem:[#allocation5 + $0xe0] sm:$0xff]  ;;  %p1686_p3 = pneg %p1685_p1 }
  0x73   : > { %1405 = vmatprep.subr.bf16.mxu0 %v1404_v14  ;;  %v1414_v32 = vpack.c.bf16 %v370_v29, %v369_v28  ;;  %v390_v37 = vld [vmem:[#allocation5 + $0xe8] sm:$0xff]  ;;  %v1418_v38 = vpack.c.bf16 %v372_v35, %v371_v34  ;;  %v373_v39 = vld [vmem:[#allocation5 + $0x60] sm:$0xff]  ;;  %v391_v42 = vld [vmem:[#allocation5 + $0xf0] sm:$0xff]  ;;  %p1692_p12 = por %p1691_p9, %p1690_p7 }
  0x74   : > { %v374_v40 = vld [vmem:[#allocation5 + $0x68] sm:$0xff]  ;;  %v1420_v41 = vpack.c.bf16 %v390_v37, %v389_v36  ;;  %v625_v43 = vld [vmem:[#allocation7] sm:$0xff]  ;;  %v392_v45 = vld [vmem:[#allocation5 + $0xf8] sm:$0xff] }
  0x75   : > { %v626_v44 = vld [vmem:[#allocation7 + $0x8] sm:$0xff]  ;;  %v627_v47 = vld [vmem:[#allocation7 + $0x10] sm:$0xff]  ;;  %v628_v48 = vld [vmem:[#allocation7 + $0x18] sm:$0xff]  ;;  %v1422_v50 = vpack.c.bf16 %v374_v40, %v373_v39  ;;  %v1424_v51 = vpack.c.bf16 %v392_v45, %v391_v42  ;;  %p1693_p2 = pnand %p1692_p12, %p1686_p3 }
  0x76   : > { %1407 = vmatpush3.bf16.msra.mxu0 %v1406_v19  ;;  %v1428_v46 = vpack.c.bf16 %v626_v44, %v625_v43  ;;  %v1432_v49 = vpack.c.bf16 %v628_v48, %v627_v47  ;;  %v375_v52 = vld [vmem:[#allocation5 + $0x70] sm:$0xff]  ;;  %v376_v53 = vld [vmem:[#allocation5 + $0x78] sm:$0xff]  ;;  %v329_v55 = vld [vmem:[%s1981_s21] sm:$0xff] }
  0x77   : > { %1409 = vmatprep.subr.bf16.mxu0 %v1408_v20  ;;  %v1426_v54 = vpack.c.bf16 %v376_v53, %v375_v52  ;;  %v332_v56 = vld [vmem:[%s1981_s21 + $0x18] sm:$0xff]  ;;  %v331_v57 = vld [vmem:[%s1981_s21 + $0x10] sm:$0xff]  ;;  %v334_v58 = vld [vmem:[%s1981_s21 + $0x28] sm:$0xff] }
  0x78   : > { %1429 = vmatprep.subr.bf16.mxu1 %v1428_v46  ;;  %v333_v59 = vld [vmem:[%s1981_s21 + $0x20] sm:$0xff]  ;;  %v336_v60 = vld [vmem:[%s1981_s21 + $0x38] sm:$0xff]  ;;  %v335_v61 = vld [vmem:[%s1981_s21 + $0x30] sm:$0xff] }
  0x79   : > { %1431 = vmatpush3.bf16.msra.mxu1 %v1428_v46  ;;  %v338_v62 = vld [vmem:[%s1981_s21 + $0x48] sm:$0xff]  ;;  %v337_v63 = vld [vmem:[%s1981_s21 + $0x40] sm:$0xff]  ;;  %v340_v0 = vld [vmem:[%s1981_s21 + $0x58] sm:$0xff] }
  0x7a   : > { %1411 = vmatpush3.bf16.msra.mxu0 %v1410_v26  ;;  %1433 = vmatprep.subr.bf16.mxu1 %v1432_v49  ;;  %v339_v1 = vld [vmem:[%s1981_s21 + $0x50] sm:$0xff]  ;;  %v342_v2 = vld [vmem:[%s1981_s21 + $0x68] sm:$0xff]  ;;  %v341_v3 = vld [vmem:[%s1981_s21 + $0x60] sm:$0xff] }
  0x7b   : > { %1413 = vmatprep.subr.bf16.mxu0 %v1412_v27  ;;  %v344_v4 = vld [vmem:[%s1981_s21 + $0x78] sm:$0xff]  ;;  %v343_v5 = vld [vmem:[%s1981_s21 + $0x70] sm:$0xff]  ;;  %v346_v6 = vld [vmem:[%s1981_s21 + $0x88] sm:$0xff] }
  0x7c   : > { %v345_v7 = vld [vmem:[%s1981_s21 + $0x80] sm:$0xff]  ;;  %v348_v8 = vld [vmem:[%s1981_s21 + $0x98] sm:$0xff]  ;;  %v347_v9 = vld [vmem:[%s1981_s21 + $0x90] sm:$0xff] }
  0x7d   : > { %1435 = vmatpush3.bf16.msra.mxu1 %v1432_v49  ;;  %v350_v10 = vld [vmem:[%s1981_s21 + $0xa8] sm:$0xff]  ;;  %v349_v11 = vld [vmem:[%s1981_s21 + $0xa0] sm:$0xff]  ;;  %v352_v12 = vld [vmem:[%s1981_s21 + $0xb8] sm:$0xff] }
  0x7e   : > { %1415 = vmatpush3.bf16.msra.mxu0 %v1414_v32  ;;  %v351_v13 = vld [vmem:[%s1981_s21 + $0xb0] sm:$0xff]  ;;  %v354_v14 = vld [vmem:[%s1981_s21 + $0xc8] sm:$0xff]  ;;  %v353_v15 = vld [vmem:[%s1981_s21 + $0xc0] sm:$0xff] }
  0x7f   : > { %1417 = vmatprep.subr.bf16.mxu0 %v1416_v33  ;;  %v356_v16 = vld [vmem:[%s1981_s21 + $0xd8] sm:$0xff]  ;;  %v355_v17 = vld [vmem:[%s1981_s21 + $0xd0] sm:$0xff]  ;;  %v358_v18 = vld [vmem:[%s1981_s21 + $0xe8] sm:$0xff] }
  0x80   : > { %v357_v19 = vld [vmem:[%s1981_s21 + $0xe0] sm:$0xff]  ;;  %v360_v20 = vld [vmem:[%s1981_s21 + $0xf8] sm:$0xff]  ;;  %v359_v21 = vld [vmem:[%s1981_s21 + $0xf0] sm:$0xff] }
  0x81   : > { %v629_v22 = vld [vmem:[#allocation7 + $0x20] sm:$0xff]  ;;  %v630_v23 = vld [vmem:[#allocation7 + $0x28] sm:$0xff]  ;;  %v631_v25 = vld [vmem:[#allocation7 + $0x30] sm:$0xff] }
  0x82   : > { %1419 = vmatpush3.bf16.msra.mxu0 %v1418_v38  ;;  %v1436_v24 = vpack.c.bf16 %v630_v23, %v629_v22  ;;  %v632_v26 = vld [vmem:[#allocation7 + $0x38] sm:$0xff]  ;;  %v633_v28 = vld [vmem:[#allocation7 + $0x40] sm:$0xff]  ;;  %v634_v29 = vld [vmem:[#allocation7 + $0x48] sm:$0xff] }
  0x83   : > { %1421 = vmatprep.subr.bf16.mxu0 %v1420_v41  ;;  %v1440_v27 = vpack.c.bf16 %v632_v26, %v631_v25  ;;  %v1444_v30 = vpack.c.bf16 %v634_v29, %v633_v28  ;;  %v635_v31 = vld [vmem:[#allocation7 + $0x50] sm:$0xff]  ;;  %v636_v32 = vld [vmem:[#allocation7 + $0x58] sm:$0xff]  ;;  %v637_v34 = vld [vmem:[#allocation7 + $0x60] sm:$0xff] }
  0x84   : > { %1437 = vmatprep.subr.bf16.mxu1 %v1436_v24  ;;  %v1448_v33 = vpack.c.bf16 %v636_v32, %v635_v31  ;;  %v638_v35 = vld [vmem:[#allocation7 + $0x68] sm:$0xff]  ;;  %v639_v37 = vld [vmem:[#allocation7 + $0x70] sm:$0xff]  ;;  %v640_v38 = vld [vmem:[#allocation7 + $0x78] sm:$0xff] }
  0x85   : > { %1439 = vmatpush3.bf16.msra.mxu1 %v1436_v24  ;;  %v1452_v36 = vpack.c.bf16 %v638_v35, %v637_v34  ;;  %v1456_v39 = vpack.c.bf16 %v640_v38, %v639_v37  ;;  %v2026_v41 = vld [vmem:[%s2415_s2] ss:$0 sm:$0xff] }
  0x86   : > { %1423 = vmatpush3.bf16.msra.mxu0 %v1422_v50  ;;  %1441 = vmatprep.subr.bf16.mxu1 %v1440_v27 }
  0x87   : > { %1425 = vmatprep.subr.bf16.mxu0 %v1424_v51 }
  0x89   : > { %1443 = vmatpush3.bf16.msra.mxu1 %v1440_v27 }
  0x8a   : > { %1427 = vmatpush3.bf16.msra.mxu0 %v1426_v54  ;;  %1445 = vmatprep.subr.bf16.mxu1 %v1444_v30 }
  0x8d   : > { %465 = vmatmul.mubr.f32.vlgmr.msra.gmra.mrb[0].mxu0 %v329_v55  ;;  %1447 = vmatpush3.bf16.msra.mxu1 %v1444_v30 }
  0x8e   : > { %469 = vmatprep.mubr.f32.mxu0 %v332_v56  ;;  %1449 = vmatprep.subr.bf16.mxu1 %v1448_v33 }
  0x91   : > { %470 = vmatmul.mubr.f32.gmra.mrb[2].mxu0 %v331_v57  ;;  %1451 = vmatpush3.bf16.msra.mxu1 %v1448_v33 }
  0x92   : > { %474 = vmatprep.mubr.f32.mxu0 %v334_v58  ;;  %1453 = vmatprep.subr.bf16.mxu1 %v1452_v36 }
  0x95   : > { %475 = vmatmul.mubr.f32.gmra.mrb[4].mxu0 %v333_v59  ;;  %1455 = vmatpush3.bf16.msra.mxu1 %v1452_v36 }
  0x96   : > { %479 = vmatprep.mubr.f32.mxu0 %v336_v60  ;;  %1457 = vmatprep.subr.bf16.mxu1 %v1456_v39 }
  0x99   : > { %480 = vmatmul.mubr.f32.gmra.mrb[6].mxu0 %v335_v61  ;;  %1459 = vmatpush3.bf16.msra.mxu1 %v1456_v39 }
  0x9a   : > { %484 = vmatprep.mubr.f32.mxu0 %v338_v62 }
  0x9d   : > { %485 = vmatmul.mubr.f32.gmra.mrb[8].mxu0 %v337_v63 }
  0x9e   : > { %489 = vmatprep.mubr.f32.mxu0 %v340_v0 }
  0xa1   : > { %490 = vmatmul.mubr.f32.gmra.mrb[10].mxu0 %v339_v1 }
  0xa2   : > { %494 = vmatprep.mubr.f32.mxu0 %v342_v2 }
  0xa5   : > { %495 = vmatmul.mubr.f32.gmra.mrb[12].mxu0 %v341_v3 }
  0xa6   : > { %499 = vmatprep.mubr.f32.mxu0 %v344_v4 }
  0xa9   : > { %500 = vmatmul.mubr.f32.gmra.mrb[14].mxu0 %v343_v5 }
  0xaa   : > { %504 = vmatprep.mubr.f32.mxu0 %v346_v6 }
  0xad   : > { %505 = vmatmul.mubr.f32.gmra.mrb[16].mxu0 %v345_v7 }
  0xae   : > { %509 = vmatprep.mubr.f32.mxu0 %v348_v8 }
  0xb1   : > { %510 = vmatmul.mubr.f32.gmra.mrb[18].mxu0 %v347_v9 }
  0xb2   : > { %514 = vmatprep.mubr.f32.mxu0 %v350_v10 }
  0xb5   : > { %515 = vmatmul.mubr.f32.gmra.mrb[20].mxu0 %v349_v11 }
  0xb6   : > { %519 = vmatprep.mubr.f32.mxu0 %v352_v12 }
  0xb9   : > { %520 = vmatmul.mubr.f32.gmra.mrb[22].mxu0 %v351_v13 }
  0xba   : > { %524 = vmatprep.mubr.f32.mxu0 %v354_v14 }
  0xbd   : > { %525 = vmatmul.mubr.f32.gmra.mrb[24].mxu0 %v353_v15 }
  0xbe   : > { %529 = vmatprep.mubr.f32.mxu0 %v356_v16 }
  0xc1   : > { %530 = vmatmul.mubr.f32.gmra.mrb[26].mxu0 %v355_v17 }
  0xc2   : > { %534 = vmatprep.mubr.f32.mxu0 %v358_v18 }
  0xc5   : > { %535 = vmatmul.mubr.f32.gmra.mrb[28].mxu0 %v357_v19 }
  0xc6   : > { %539 = vmatprep.mubr.f32.mxu0 %v360_v20 }
  0xc9   : > { %540 = vmatmul.mubr.f32.gmra.mrb[30].mxu0 %v359_v21 }
 0x160   : > { %v1260_v40 = vpop.f32.mrb[0].mxu0 }
 0x161   : > { %v1261_v42 = vpop.f32.mrb[1].mxu0 }
 0x162   : > { %v1262_v43 = vadd.f32 %v1261_v42, %v1260_v40 }
 0x164   : > { %v2029_v44 = vadd.f32 %v1262_v43, %v2026_v41  ;;  %v1263_v45 = vpop.f32.mrb[2].mxu0 }
 0x165   : > { %v1264_v46 = vpop.f32.mrb[3].mxu0 }
 0x166   : > { %v1265_v47 = vadd.f32 %v1264_v46, %v1263_v45  ;;  %v561_v48 = vmul.f32 0.70710677, %v2029_v44  ;;  %v545_v1 = vmul.f32 0.5, %v2029_v44 }
 0x168   : > { %v2033_v49 = vadd.f32 %v1265_v47, %v2026_v41  ;;  %v1266_v50 = vpop.f32.mrb[4].mxu0  ;;  %1533 = verf.f32 %v561_v48 }
 0x169   : > { %v1267_v51 = vpop.f32.mrb[5].mxu0 }
 0x16a   : > { %v562_v52 = vmul.f32 0.70710677, %v2033_v49  ;;  %v1268_v53 = vadd.f32 %v1267_v51, %v1266_v50  ;;  %v546_v10 = vmul.f32 0.5, %v2033_v49 }
 0x16c   : > { %1535 = verf.f32 %v562_v52  ;;  %v2037_v54 = vadd.f32 %v1268_v53, %v2026_v41  ;;  %v1269_v55 = vpop.f32.mrb[6].mxu0 }
 0x16d   : > { %v1270_v56 = vpop.f32.mrb[7].mxu0 }
 0x16e   : > { %v563_v57 = vmul.f32 0.70710677, %v2037_v54  ;;  %v1271_v58 = vadd.f32 %v1270_v56, %v1269_v55  ;;  %v547_v19 = vmul.f32 0.5, %v2037_v54 }
 0x170   : > { %1537 = verf.f32 %v563_v57  ;;  %v2041_v59 = vadd.f32 %v1271_v58, %v2026_v41  ;;  %v1272_v60 = vpop.f32.mrb[8].mxu0 }
 0x171   : > { %v1273_v61 = vpop.f32.mrb[9].mxu0 }
 0x172   : > { %v1534_v62 = vpop.eup %1533  ;;  %v564_v63 = vmul.f32 0.70710677, %v2041_v59  ;;  %v1274_v0 = vadd.f32 %v1273_v61, %v1272_v60  ;;  %v548_v28 = vmul.f32 0.5, %v2041_v59 }
 0x173   : > { %v593_v2 = vadd.f32 1.0, %v1534_v62 }
 0x174   : > { %1539 = verf.f32 %v564_v63  ;;  %v2046_v3 = vadd.f32 %v1274_v0, %v2026_v41  ;;  %v1275_v4 = vpop.f32.mrb[10].mxu0 }
 0x175   : > { %v1276_v5 = vpop.f32.mrb[11].mxu0  ;;  %v609_v6 = vmul.f32 %v593_v2, %v545_v1 }
 0x176   : > { %v1536_v7 = vpop.eup %1535  ;;  %v565_v8 = vmul.f32 0.70710677, %v2046_v3  ;;  %v1277_v9 = vadd.f32 %v1276_v5, %v1275_v4  ;;  %v549_v37 = vmul.f32 0.5, %v2046_v3 }
 0x177   : > { %1372 = vmatprep.mubr.f32.mxu1 %v609_v6  ;;  %v594_v11 = vadd.f32 1.0, %v1536_v7 }
 0x178   : > { %1541 = verf.f32 %v565_v8  ;;  %v2051_v12 = vadd.f32 %v1277_v9, %v2026_v41  ;;  %v1278_v13 = vpop.f32.mrb[12].mxu0 }
 0x179   : > { %v1279_v14 = vpop.f32.mrb[13].mxu0  ;;  %v610_v15 = vmul.f32 %v594_v11, %v546_v10 }
 0x17a   : > { %v1538_v16 = vpop.eup %1537  ;;  %v566_v17 = vmul.f32 0.70710677, %v2051_v12  ;;  %v1280_v18 = vadd.f32 %v1279_v14, %v1278_v13  ;;  %v550_v48 = vmul.f32 0.5, %v2051_v12 }
 0x17b   : > { %1373 = vmatmul.mubr.f32.vlgmr.msra.gmra.mrb[0].mxu1 %v610_v15  ;;  %v595_v20 = vadd.f32 1.0, %v1538_v16 }
 0x17c   : > { %1543 = verf.f32 %v566_v17  ;;  %v2056_v21 = vadd.f32 %v1280_v18, %v2026_v41  ;;  %v1281_v22 = vpop.f32.mrb[14].mxu0 }
 0x17d   : > { %v1282_v23 = vpop.f32.mrb[15].mxu0  ;;  %v611_v24 = vmul.f32 %v595_v20, %v547_v19 }
 0x17e   : > { %v1540_v25 = vpop.eup %1539  ;;  %v567_v26 = vmul.f32 0.70710677, %v2056_v21  ;;  %v1283_v27 = vadd.f32 %v1282_v23, %v1281_v22  ;;  %v551_v60 = vmul.f32 0.5, %v2056_v21 }
 0x17f   : > { %1375 = vmatprep.mubr.f32.mxu1 %v611_v24  ;;  %v596_v29 = vadd.f32 1.0, %v1540_v25 }
 0x180   : > { %1545 = verf.f32 %v567_v26  ;;  %v2061_v30 = vadd.f32 %v1283_v27, %v2026_v41  ;;  %v1284_v31 = vpop.f32.mrb[16].mxu0 }
 0x181   : > { %v1285_v32 = vpop.f32.mrb[17].mxu0  ;;  %v612_v33 = vmul.f32 %v596_v29, %v548_v28 }
 0x182   : > { %v1542_v34 = vpop.eup %1541  ;;  %v568_v35 = vmul.f32 0.70710677, %v2061_v30  ;;  %v1286_v36 = vadd.f32 %v1285_v32, %v1284_v31  ;;  %v552_v6 = vmul.f32 0.5, %v2061_v30 }
 0x183   : > { %1376 = vmatmul.mubr.f32.gmra.mrb[2].mxu1 %v612_v33  ;;  %v597_v38 = vadd.f32 1.0, %v1542_v34 }
 0x184   : > { %1547 = verf.f32 %v568_v35  ;;  %v2066_v39 = vadd.f32 %v1286_v36, %v2026_v41  ;;  %v1287_v40 = vpop.f32.mrb[18].mxu0 }
 0x185   : > { %v1288_v42 = vpop.f32.mrb[19].mxu0  ;;  %v613_v43 = vmul.f32 %v597_v38, %v549_v37 }
 0x186   : > { %v1544_v45 = vpop.eup %1543  ;;  %v569_v46 = vmul.f32 0.70710677, %v2066_v39  ;;  %v1289_v47 = vadd.f32 %v1288_v42, %v1287_v40  ;;  %v553_v16 = vmul.f32 0.5, %v2066_v39 }
 0x187   : > { %1378 = vmatprep.mubr.f32.mxu1 %v613_v43  ;;  %v598_v50 = vadd.f32 1.0, %v1544_v45 }
 0x188   : > { %1549 = verf.f32 %v569_v46  ;;  %v2071_v51 = vadd.f32 %v1289_v47, %v2026_v41  ;;  %v1290_v52 = vpop.f32.mrb[20].mxu0 }
 0x189   : > { %v1291_v53 = vpop.f32.mrb[21].mxu0  ;;  %v614_v55 = vmul.f32 %v598_v50, %v550_v48 }
 0x18a   : > { %v1546_v56 = vpop.eup %1545  ;;  %v570_v57 = vmul.f32 0.70710677, %v2071_v51  ;;  %v1292_v58 = vadd.f32 %v1291_v53, %v1290_v52  ;;  %v554_v26 = vmul.f32 0.5, %v2071_v51 }
 0x18b   : > { %1379 = vmatmul.mubr.f32.gmra.mrb[4].mxu1 %v614_v55  ;;  %v599_v61 = vadd.f32 1.0, %v1546_v56 }
 0x18c   : > { %1551 = verf.f32 %v570_v57  ;;  %v2076_v62 = vadd.f32 %v1292_v58, %v2026_v41  ;;  %v1293_v63 = vpop.f32.mrb[22].mxu0 }
 0x18d   : > { %v1294_v0 = vpop.f32.mrb[23].mxu0  ;;  %v615_v1 = vmul.f32 %v599_v61, %v551_v60 }
 0x18e   : > { %v1548_v2 = vpop.eup %1547  ;;  %v571_v4 = vmul.f32 0.70710677, %v2076_v62  ;;  %v1295_v5 = vadd.f32 %v1294_v0, %v1293_v63  ;;  %v555_v36 = vmul.f32 0.5, %v2076_v62 }
 0x18f   : > { %1381 = vmatprep.mubr.f32.mxu1 %v615_v1  ;;  %v600_v7 = vadd.f32 1.0, %v1548_v2 }
 0x190   : > { %1553 = verf.f32 %v571_v4  ;;  %v2081_v8 = vadd.f32 %v1295_v5, %v2026_v41  ;;  %v1296_v9 = vpop.f32.mrb[24].mxu0 }
 0x191   : > { %v1297_v10 = vpop.f32.mrb[25].mxu0  ;;  %v616_v11 = vmul.f32 %v600_v7, %v552_v6 }
 0x192   : > { %v1550_v13 = vpop.eup %1549  ;;  %v572_v14 = vmul.f32 0.70710677, %v2081_v8  ;;  %v1298_v15 = vadd.f32 %v1297_v10, %v1296_v9  ;;  %v556_v48 = vmul.f32 0.5, %v2081_v8 }
 0x193   : > { %1382 = vmatmul.mubr.f32.gmra.mrb[6].mxu1 %v616_v11  ;;  %v601_v17 = vadd.f32 1.0, %v1550_v13  ;;  %v2111_v11 = vld [vmem:[%s2417_s4] ss:$0 sm:$0xff] }
 0x194   : > { %1555 = verf.f32 %v572_v14  ;;  %v2086_v18 = vadd.f32 %v1298_v15, %v2026_v41  ;;  %v1299_v19 = vpop.f32.mrb[26].mxu0 }
 0x195   : > { %v1300_v20 = vpop.f32.mrb[27].mxu0  ;;  %v617_v22 = vmul.f32 %v601_v17, %v553_v16 }
 0x196   : > { %v1552_v23 = vpop.eup %1551  ;;  %v573_v24 = vmul.f32 0.70710677, %v2086_v18  ;;  %v1301_v25 = vadd.f32 %v1300_v20, %v1299_v19  ;;  %v557_v57 = vmul.f32 0.5, %v2086_v18 }
 0x197   : > { %1384 = vmatprep.mubr.f32.mxu1 %v617_v22  ;;  %v602_v27 = vadd.f32 1.0, %v1552_v23 }
 0x198   : > { %1557 = verf.f32 %v573_v24  ;;  %v2091_v28 = vadd.f32 %v1301_v25, %v2026_v41  ;;  %v1302_v29 = vpop.f32.mrb[28].mxu0 }
 0x199   : > { %v1303_v31 = vpop.f32.mrb[29].mxu0  ;;  %v618_v32 = vmul.f32 %v602_v27, %v554_v26 }
 0x19a   : > { %v1554_v33 = vpop.eup %1553  ;;  %v574_v34 = vmul.f32 0.70710677, %v2091_v28  ;;  %v1304_v35 = vadd.f32 %v1303_v31, %v1302_v29  ;;  %v558_v63 = vmul.f32 0.5, %v2091_v28 }
 0x19b   : > { %1385 = vmatmul.mubr.f32.gmra.mrb[8].mxu1 %v618_v32  ;;  %v603_v37 = vadd.f32 1.0, %v1554_v33 }
 0x19c   : > { %1559 = verf.f32 %v574_v34  ;;  %v2096_v38 = vadd.f32 %v1304_v35, %v2026_v41  ;;  %v1305_v40 = vpop.f32.mrb[30].mxu0 }
 0x19d   : > { %v1306_v42 = vpop.f32.mrb[31].mxu0  ;;  %v619_v43 = vmul.f32 %v603_v37, %v555_v36 }
 0x19e   : > { %v1556_v45 = vpop.eup %1555  ;;  %v575_v46 = vmul.f32 0.70710677, %v2096_v38  ;;  %v1307_v47 = vadd.f32 %v1306_v42, %v1305_v40 }
 0x19f   : > { %1387 = vmatprep.mubr.f32.mxu1 %v619_v43  ;;  %v604_v50 = vadd.f32 1.0, %v1556_v45 }
 0x1a0   : > { %1561 = verf.f32 %v575_v46  ;;  %v2101_v52 = vadd.f32 %v1307_v47, %v2026_v41  ;;  %v559_v41 = vmul.f32 0.5, %v2096_v38 }
 0x1a1   : > { %v620_v53 = vmul.f32 %v604_v50, %v556_v48 }
 0x1a2   : > { %v1558_v55 = vpop.eup %1557  ;;  %v576_v56 = vmul.f32 0.70710677, %v2101_v52  ;;  %v560_v7 = vmul.f32 0.5, %v2101_v52 }
 0x1a3   : > { %1388 = vmatmul.mubr.f32.gmra.mrb[10].mxu1 %v620_v53  ;;  %v605_v58 = vadd.f32 1.0, %v1558_v55 }
 0x1a4   : > { %1563 = verf.f32 %v576_v56 }
 0x1a5   : > { %v621_v60 = vmul.f32 %v605_v58, %v557_v57 }
 0x1a6   : > { %v1560_v61 = vpop.eup %1559 }
 0x1a7   : > { %1390 = vmatprep.mubr.f32.mxu1 %v621_v60  ;;  %v606_v0 = vadd.f32 1.0, %v1560_v61 }
 0x1a9   : > { %v622_v1 = vmul.f32 %v606_v0, %v558_v63 }
 0x1aa   : > { %v1562_v2 = vpop.eup %1561 }
 0x1ab   : > { %1391 = vmatmul.mubr.f32.gmra.mrb[12].mxu1 %v622_v1  ;;  %v607_v4 = vadd.f32 1.0, %v1562_v2 }
 0x1ad   : > { %v623_v5 = vmul.f32 %v607_v4, %v559_v41 }
 0x1ae   : > { %v1564_v6 = vpop.eup %1563 }
 0x1af   : > { %1393 = vmatprep.mubr.f32.mxu1 %v623_v5  ;;  %v608_v9 = vadd.f32 1.0, %v1564_v6 }
 0x1b1   : > { %v624_v10 = vmul.f32 %v608_v9, %v560_v7 }
 0x1b3   : > { %1394 = vmatmul.mubr.f32.gmra.mrb[14].mxu1 %v624_v10 }
 0x24e   : > { %v1374_v13 = vpop.f32.mrb[0].mxu1 }
 0x24f   : > { %v720_v14 = vadd.f32 %v1374_v13, %v2111_v11  ;;  %v714_v15 = vpop.f32.mrb[1].mxu1 }
 0x250   : > { %v715_v17 = vadd.f32 %v2111_v11, %v714_v15 }
 0x251   : > { %v2115_v16 = vadd.f32 %v720_v14, %v2033_v49 }
 0x252   : > { %v2122_v20 = vadd.f32 %v715_v17, %v2029_v44 }
 0x253   : > { %811 = vadd.xlane.f32.xlu0 %v2115_v16  ;;  %v859_v19 = vmul.f32 %v2115_v16, %v2115_v16 }
 0x254   : > { %v858_v26 = vmul.f32 %v2122_v20, %v2122_v20 }
 0x255   : > { %876 = vadd.xlane.f32.xlu1 %v859_v19 }
 0x256   : > { %v1377_v22 = vpop.f32.mrb[2].mxu1 }
 0x257   : > { %v730_v23 = vadd.f32 %v1377_v22, %v2111_v11  ;;  %v724_v24 = vpop.f32.mrb[3].mxu1  ;;  %809 = vadd.xlane.f32.xlu0 %v2122_v20 }
 0x258   : > { %v725_v49 = vadd.f32 %v2111_v11, %v724_v24 }
 0x259   : > { %v2128_v25 = vadd.f32 %v730_v23, %v2041_v59 }
 0x25a   : > { %v2133_v27 = vadd.f32 %v725_v49, %v2037_v54 }
 0x25b   : > { %815 = vadd.xlane.f32.xlu1 %v2128_v25  ;;  %874 = vadd.xlane.f32.xlu0 %v858_v26  ;;  %v861_v33 = vmul.f32 %v2128_v25, %v2128_v25 }
 0x25c   : > { %v860_v44 = vmul.f32 %v2133_v27, %v2133_v27 }
 0x25e   : > { %v1380_v29 = vpop.f32.mrb[4].mxu1 }
 0x25f   : > { %v734_v31 = vpop.f32.mrb[5].mxu1  ;;  %813 = vadd.xlane.f32.xlu1 %v2133_v27  ;;  %878 = vadd.xlane.f32.xlu0 %v860_v44  ;;  %v740_v32 = vadd.f32 %v1380_v29, %v2111_v11 }
 0x260   : > { %v735_v59 = vadd.f32 %v2111_v11, %v734_v31 }
 0x261   : > { %v2148_v34 = vadd.f32 %v740_v32, %v2051_v12 }
 0x262   : > { %v2144_v54 = vadd.f32 %v735_v59, %v2046_v3 }
 0x263   : > { %880 = vadd.xlane.f32.xlu1 %v861_v33  ;;  %v863_v3 = vmul.f32 %v2148_v34, %v2148_v34 }
 0x264   : > { %817 = vadd.xlane.f32.xlu0 %v2144_v54  ;;  %v862_v36 = vmul.f32 %v2144_v54, %v2144_v54 }
 0x266   : > { %v1383_v35 = vpop.f32.mrb[6].mxu1 }
 0x267   : > { %v744_v37 = vpop.f32.mrb[7].mxu1  ;;  %819 = vadd.xlane.f32.xlu1 %v2148_v34  ;;  %v750_v42 = vadd.f32 %v1383_v35, %v2111_v11 }
 0x268   : > { %v745_v40 = vadd.f32 %v2111_v11, %v744_v37  ;;  %882 = vadd.xlane.f32.xlu0 %v862_v36 }
 0x269   : > { %v2162_v12 = vadd.f32 %v750_v42, %v2061_v30 }
 0x26a   : > { %v2158_v43 = vadd.f32 %v745_v40, %v2056_v21 }
 0x26b   : > { %884 = vadd.xlane.f32.xlu1 %v863_v3  ;;  %v865_v21 = vmul.f32 %v2162_v12, %v2162_v12 }
 0x26c   : > { %821 = vadd.xlane.f32.xlu0 %v2158_v43  ;;  %v864_v46 = vmul.f32 %v2158_v43, %v2158_v43 }
 0x26e   : > { %v1386_v45 = vpop.f32.mrb[8].mxu1 }
 0x26f   : > { %v754_v47 = vpop.f32.mrb[9].mxu1  ;;  %823 = vadd.xlane.f32.xlu1 %v2162_v12  ;;  %v760_v50 = vadd.f32 %v1386_v45, %v2111_v11 }
 0x270   : > { %v755_v48 = vadd.f32 %v2111_v11, %v754_v47  ;;  %886 = vadd.xlane.f32.xlu0 %v864_v46 }
 0x271   : > { %v2176_v30 = vadd.f32 %v760_v50, %v2071_v51 }
 0x272   : > { %v2172_v53 = vadd.f32 %v755_v48, %v2066_v39 }
 0x273   : > { %888 = vadd.xlane.f32.xlu1 %v865_v21  ;;  %v867_v39 = vmul.f32 %v2176_v30, %v2176_v30 }
 0x274   : > { %825 = vadd.xlane.f32.xlu0 %v2172_v53  ;;  %v866_v56 = vmul.f32 %v2172_v53, %v2172_v53 }
 0x276   : > { %v1389_v55 = vpop.f32.mrb[10].mxu1 }
 0x277   : > { %v764_v57 = vpop.f32.mrb[11].mxu1  ;;  %827 = vadd.xlane.f32.xlu1 %v2176_v30  ;;  %v770_v60 = vadd.f32 %v1389_v55, %v2111_v11 }
 0x278   : > { %v765_v58 = vadd.f32 %v2111_v11, %v764_v57  ;;  %890 = vadd.xlane.f32.xlu0 %v866_v56 }
 0x279   : > { %v2190_v51 = vadd.f32 %v770_v60, %v2081_v8 }
 0x27a   : > { %v2186_v61 = vadd.f32 %v765_v58, %v2076_v62 }
 0x27b   : > { %892 = vadd.xlane.f32.xlu1 %v867_v39  ;;  %v869_v62 = vmul.f32 %v2190_v51, %v2190_v51 }
 0x27c   : > { %829 = vadd.xlane.f32.xlu0 %v2186_v61  ;;  %v868_v0 = vmul.f32 %v2186_v61, %v2186_v61 }
 0x27e   : > { %v1392_v63 = vpop.f32.mrb[12].mxu1 }
 0x27f   : > { %v774_v1 = vpop.f32.mrb[13].mxu1  ;;  %831 = vadd.xlane.f32.xlu1 %v2190_v51  ;;  %v780_v41 = vadd.f32 %v1392_v63, %v2111_v11  ;;  %v2239_v63 = vld [vmem:[%s2418_s5] ss:$0 sm:$0xff] }
 0x280   : > { %v775_v2 = vadd.f32 %v2111_v11, %v774_v1  ;;  %894 = vadd.xlane.f32.xlu0 %v868_v0 }
 0x281   : > { %v2204_v8 = vadd.f32 %v780_v41, %v2091_v28 }
 0x282   : > { %v2200_v4 = vadd.f32 %v775_v2, %v2086_v18 }
 0x283   : > { %896 = vadd.xlane.f32.xlu1 %v869_v62  ;;  %v871_v18 = vmul.f32 %v2204_v8, %v2204_v8 }
 0x284   : > { %833 = vadd.xlane.f32.xlu0 %v2200_v4  ;;  %v870_v6 = vmul.f32 %v2200_v4, %v2200_v4 }
 0x286   : > { %v1395_v5 = vpop.f32.mrb[14].mxu1 }
 0x287   : > { %v784_v7 = vpop.f32.mrb[15].mxu1  ;;  %835 = vadd.xlane.f32.xlu1 %v2204_v8  ;;  %v790_v10 = vadd.f32 %v1395_v5, %v2111_v11 }
 0x288   : > { %v785_v9 = vadd.f32 %v2111_v11, %v784_v7  ;;  %898 = vadd.xlane.f32.xlu0 %v870_v6 }
 0x289   : > { %v2218_v28 = vadd.f32 %v790_v10, %v2101_v52 }
 0x28a   : > { %v2214_v13 = vadd.f32 %v785_v9, %v2096_v38 }
 0x28b   : > { %900 = vadd.xlane.f32.xlu1 %v871_v18  ;;  %v873_v11 = vmul.f32 %v2218_v28, %v2218_v28 }
 0x28c   : > { %837 = vadd.xlane.f32.xlu0 %v2214_v13  ;;  %v872_v14 = vmul.f32 %v2214_v13, %v2214_v13 }
 0x28f   : > { %839 = vadd.xlane.f32.xlu1 %v2218_v28 }
 0x290   : > { %902 = vadd.xlane.f32.xlu0 %v872_v14 }
 0x293   : > { %904 = vadd.xlane.f32.xlu1 %v873_v11 }
 0x2e0   : > { %v812_v15 = vpop.xlane.xlu0 %811 }
 0x2e1   : > { %v843_v17 = vmul.f32 0.0078125, %v812_v15 }
 0x2e2   : > { %v877_v38 = vpop.xlane.xlu1 %876 }
 0x2e3   : > { %v923_v19 = vmul.f32 %v843_v17, %v843_v17  ;;  %v907_v22 = vmul.f32 0.0078125, %v877_v38  ;;  %v1003_v58 = vsub.f32 %v2115_v16, %v843_v17  ;;  %v2249_v16 = vld [vmem:[%s2419_s6] ss:$0 sm:$0xff] }
 0x2e4   : > { %v810_v23 = vpop.xlane.xlu0 %809 }
 0x2e5   : > { %v939_v24 = vsub.f32 %v907_v22, %v923_v19  ;;  %v842_v49 = vmul.f32 0.0078125, %v810_v23 }
 0x2e7   : > { %v955_v52 = vmax.f32 %v939_v24, 0.0  ;;  %v922_v31 = vmul.f32 %v842_v49, %v842_v49  ;;  %v1002_v38 = vsub.f32 %v2122_v20, %v842_v49 }
 0x2e8   : > { %v816_v26 = vpop.xlane.xlu1 %815  ;;  %v875_v44 = vpop.xlane.xlu0 %874 }
 0x2e9   : > { %v971_v29 = vadd.f32 1e-05, %v955_v52  ;;  %v906_v59 = vmul.f32 0.0078125, %v875_v44  ;;  %v2225_v36 = vmul.f32 0.0078125, %v816_v26 }
 0x2eb   : > { %1565 = vrsqrt.f32 %v971_v29  ;;  %v938_v32 = vsub.f32 %v906_v59, %v922_v31  ;;  %v925_v47 = vmul.f32 %v2225_v36, %v2225_v36 }
 0x2ec   : > { %v814_v33 = vpop.xlane.xlu1 %813  ;;  %v879_v35 = vpop.xlane.xlu0 %878 }
 0x2ed   : > { %v954_v37 = vmax.f32 %v938_v32, 0.0  ;;  %v2227_v40 = vmul.f32 0.0078125, %v814_v33  ;;  %v908_v45 = vmul.f32 0.0078125, %v879_v35 }
 0x2ef   : > { %v970_v42 = vadd.f32 1e-05, %v954_v37  ;;  %v924_v3 = vmul.f32 %v2227_v40, %v2227_v40  ;;  %v1004_v37 = vsub.f32 %v2133_v27, %v2227_v40 }
 0x2f0   : > { %v881_v46 = vpop.xlane.xlu1 %880 }
 0x2f1   : > { %1567 = vrsqrt.f32 %v970_v42  ;;  %v940_v48 = vsub.f32 %v908_v45, %v924_v3  ;;  %v909_v50 = vmul.f32 0.0078125, %v881_v46  ;;  %v818_v21 = vpop.xlane.xlu0 %817 }
 0x2f2   : > { %v2233_v55 = vmul.f32 0.0078125, %v818_v21 }
 0x2f3   : > { %v956_v56 = vmax.f32 %v940_v48, 0.0  ;;  %v941_v57 = vsub.f32 %v909_v50, %v925_v47  ;;  %v1005_v50 = vsub.f32 %v2128_v25, %v2225_v36 }
 0x2f4   : > { %v820_v60 = vpop.xlane.xlu1 %819  ;;  %v926_v5 = vmul.f32 %v2233_v55, %v2233_v55 }
 0x2f5   : > { %v1566_v39 = vpop.eup %1565  ;;  %v972_v0 = vadd.f32 1e-05, %v956_v56  ;;  %v957_v1 = vmax.f32 %v941_v57, 0.0  ;;  %v2241_v2 = vmul.f32 0.0078125, %v820_v60  ;;  %v883_v41 = vpop.xlane.xlu0 %882 }
 0x2f6   : > { %v1019_v62 = vmul.f32 %v1566_v39, %v1003_v58  ;;  %v910_v6 = vmul.f32 0.0078125, %v883_v41 }
 0x2f7   : > { %1569 = vrsqrt.f32 %v972_v0  ;;  %v973_v7 = vadd.f32 1e-05, %v957_v1  ;;  %v927_v14 = vmul.f32 %v2241_v2, %v2241_v2 }
 0x2f8   : > { %v1042_v9 = vmul.f32 %v2239_v63, %v1019_v62  ;;  %v942_v10 = vsub.f32 %v910_v6, %v926_v5  ;;  %v885_v18 = vpop.xlane.xlu1 %884 }
 0x2f9   : > { %1571 = vrsqrt.f32 %v973_v7  ;;  %v911_v11 = vmul.f32 0.0078125, %v885_v18  ;;  %v822_v15 = vpop.xlane.xlu0 %821  ;;  %v1006_v7 = vsub.f32 %v2144_v54, %v2233_v55 }
 0x2fa   : > { %v1065_v17 = vadd.f32 %v2249_v16, %v1042_v9  ;;  %v958_v19 = vmax.f32 %v942_v10, 0.0  ;;  %v2256_v22 = vmul.f32 0.0078125, %v822_v15 }
 0x2fb   : > { %v1568_v23 = vpop.eup %1567  ;;  %v943_v24 = vsub.f32 %v911_v11, %v927_v14 }
 0x2fc   : > { %1081 = vst [vmem:[%s2258_s14 + $0x8] sm:$0xff] %v1065_v17  ;;  %v1018_v52 = vmul.f32 %v1568_v23, %v1002_v38  ;;  %v974_v26 = vadd.f32 1e-05, %v958_v19  ;;  %v824_v44 = vpop.xlane.xlu1 %823  ;;  %v928_v20 = vmul.f32 %v2256_v22, %v2256_v22  ;;  %v1007_v23 = vsub.f32 %v2148_v34, %v2241_v2 }
 0x2fd   : > { %v959_v29 = vmax.f32 %v943_v24, 0.0  ;;  %v2261_v31 = vmul.f32 0.0078125, %v824_v44  ;;  %v887_v59 = vpop.xlane.xlu0 %886 }
 0x2fe   : > { %v1041_v32 = vmul.f32 %v2239_v63, %v1018_v52  ;;  %1573 = vrsqrt.f32 %v974_v26  ;;  %v912_v49 = vmul.f32 0.0078125, %v887_v59 }
 0x2ff   : > { %v975_v33 = vadd.f32 1e-05, %v959_v29  ;;  %v929_v46 = vmul.f32 %v2261_v31, %v2261_v31 }
 0x300   : > { %v1064_v35 = vadd.f32 %v2249_v16, %v1041_v32  ;;  %v944_v42 = vsub.f32 %v912_v49, %v928_v20  ;;  %v889_v3 = vpop.xlane.xlu1 %888 }
 0x301   : > { %v1570_v45 = vpop.eup %1569  ;;  %1575 = vrsqrt.f32 %v975_v33  ;;  %v913_v47 = vmul.f32 0.0078125, %v889_v3  ;;  %v826_v48 = vpop.xlane.xlu0 %825 }
 0x302   : > { %1080 = vst [vmem:[%s2258_s14] sm:$0xff] %v1064_v35  ;;  %v1020_v21 = vmul.f32 %v1570_v45, %v1004_v37  ;;  %v960_v56 = vmax.f32 %v944_v42, 0.0  ;;  %v2274_v57 = vmul.f32 0.0078125, %v826_v48  ;;  %v1008_v37 = vsub.f32 %v2158_v43, %v2256_v22 }
 0x303   : > { %v1572_v58 = vpop.eup %1571  ;;  %v945_v60 = vsub.f32 %v913_v47, %v929_v46 }
 0x304   : > { %v1043_v27 = vmul.f32 %v2239_v63, %v1020_v21  ;;  %v1021_v40 = vmul.f32 %v1572_v58, %v1005_v50  ;;  %v976_v39 = vadd.f32 1e-05, %v960_v56  ;;  %v828_v0 = vpop.xlane.xlu1 %827  ;;  %v930_v41 = vmul.f32 %v2274_v57, %v2274_v57 }
 0x305   : > { %v961_v1 = vmax.f32 %v945_v60, 0.0  ;;  %v2279_v62 = vmul.f32 0.0078125, %v828_v0  ;;  %v891_v25 = vpop.xlane.xlu0 %890  ;;  %v1009_v58 = vsub.f32 %v2162_v12, %v2261_v31 }
 0x306   : > { %v1066_v36 = vadd.f32 %v2249_v16, %v1043_v27  ;;  %v1044_v5 = vmul.f32 %v2239_v63, %v1021_v40  ;;  %1577 = vrsqrt.f32 %v976_v39  ;;  %v914_v6 = vmul.f32 0.0078125, %v891_v25 }
 0x307   : > { %v977_v9 = vadd.f32 1e-05, %v961_v1  ;;  %v931_v17 = vmul.f32 %v2279_v62, %v2279_v62 }
 0x308   : > { %v1574_v10 = vpop.eup %1573  ;;  %1082 = vst [vmem:[%s2258_s14 + $0x10] sm:$0xff] %v1066_v36  ;;  %v1067_v18 = vadd.f32 %v2249_v16, %v1044_v5  ;;  %v946_v14 = vsub.f32 %v914_v6, %v930_v41  ;;  %v893_v11 = vpop.xlane.xlu1 %892 }
 0x309   : > { %v1022_v15 = vmul.f32 %v1574_v10, %v1006_v7  ;;  %1579 = vrsqrt.f32 %v977_v9  ;;  %v915_v38 = vmul.f32 0.0078125, %v893_v11  ;;  %v830_v19 = vpop.xlane.xlu0 %829  ;;  %v1010_v7 = vsub.f32 %v2172_v53, %v2274_v57 }
 0x30a   : > { %1083 = vst [vmem:[%s2258_s14 + $0x18] sm:$0xff] %v1067_v18  ;;  %v962_v24 = vmax.f32 %v946_v14, 0.0  ;;  %v2292_v54 = vmul.f32 0.0078125, %v830_v19 }
 0x30b   : > { %v1576_v55 = vpop.eup %1575  ;;  %v1045_v52 = vmul.f32 %v2239_v63, %v1022_v15  ;;  %v947_v26 = vsub.f32 %v915_v38, %v931_v17 }
 0x30c   : > { %v1023_v44 = vmul.f32 %v1576_v55, %v1007_v23  ;;  %v978_v29 = vadd.f32 1e-05, %v962_v24  ;;  %v832_v59 = vpop.xlane.xlu1 %831  ;;  %v932_v34 = vmul.f32 %v2292_v54, %v2292_v54  ;;  %v1011_v23 = vsub.f32 %v2176_v30, %v2279_v62 }
 0x30d   : > { %v1068_v32 = vadd.f32 %v2249_v16, %v1045_v52  ;;  %v963_v20 = vmax.f32 %v947_v26, 0.0  ;;  %v2296_v49 = vmul.f32 0.0078125, %v832_v59  ;;  %v895_v33 = vpop.xlane.xlu0 %894 }
 0x30e   : > { %v1046_v35 = vmul.f32 %v2239_v63, %v1023_v44  ;;  %1581 = vrsqrt.f32 %v978_v29  ;;  %v916_v2 = vmul.f32 0.0078125, %v895_v33 }
 0x30f   : > { %1084 = vst [vmem:[%s2258_s14 + $0x20] sm:$0xff] %v1068_v32  ;;  %v979_v42 = vadd.f32 1e-05, %v963_v20  ;;  %v933_v50 = vmul.f32 %v2296_v49, %v2296_v49 }
 0x310   : > { %v1578_v3 = vpop.eup %1577  ;;  %v1069_v45 = vadd.f32 %v2249_v16, %v1046_v35  ;;  %v948_v46 = vsub.f32 %v916_v2, %v932_v34  ;;  %v897_v47 = vpop.xlane.xlu1 %896  ;;  %v1012_v34 = vsub.f32 %v2186_v61, %v2292_v54 }
 0x311   : > { %v1024_v48 = vmul.f32 %v1578_v3, %v1008_v37  ;;  %1583 = vrsqrt.f32 %v979_v42  ;;  %v917_v21 = vmul.f32 0.0078125, %v897_v47  ;;  %v834_v56 = vpop.xlane.xlu0 %833 }
 0x312   : > { %1085 = vst [vmem:[%s2258_s14 + $0x28] sm:$0xff] %v1069_v45  ;;  %v964_v60 = vmax.f32 %v948_v46, 0.0  ;;  %v2310_v43 = vmul.f32 0.0078125, %v834_v56 }
 0x313   : > { %v1580_v22 = vpop.eup %1579  ;;  %v1047_v27 = vmul.f32 %v2239_v63, %v1024_v48  ;;  %v949_v40 = vsub.f32 %v917_v21, %v933_v50  ;;  %v1013_v50 = vsub.f32 %v2190_v51, %v2296_v49 }
 0x314   : > { %v1025_v39 = vmul.f32 %v1580_v22, %v1009_v58  ;;  %v980_v0 = vadd.f32 1e-05, %v964_v60  ;;  %v836_v1 = vpop.xlane.xlu1 %835  ;;  %v934_v12 = vmul.f32 %v2310_v43, %v2310_v43 }
 0x315   : > { %v1070_v41 = vadd.f32 %v2249_v16, %v1047_v27  ;;  %v965_v25 = vmax.f32 %v949_v40, 0.0  ;;  %v2314_v36 = vmul.f32 0.0078125, %v836_v1  ;;  %v899_v5 = vpop.xlane.xlu0 %898 }
 0x316   : > { %v1048_v6 = vmul.f32 %v2239_v63, %v1025_v39  ;;  %1585 = vrsqrt.f32 %v980_v0  ;;  %v918_v31 = vmul.f32 0.0078125, %v899_v5  ;;  %v1014_v39 = vsub.f32 %v2200_v4, %v2310_v43 }
 0x317   : > { %1086 = vst [vmem:[%s2258_s14 + $0x30] sm:$0xff] %v1070_v41  ;;  %v981_v9 = vadd.f32 1e-05, %v965_v25  ;;  %v935_v17 = vmul.f32 %v2314_v36, %v2314_v36  ;;  %v1015_v41 = vsub.f32 %v2204_v8, %v2314_v36 }
 0x318   : > { %v1582_v10 = vpop.eup %1581  ;;  %v1071_v18 = vadd.f32 %v2249_v16, %v1048_v6  ;;  %v950_v14 = vsub.f32 %v918_v31, %v934_v12  ;;  %v901_v11 = vpop.xlane.xlu1 %900 }
 0x319   : > { %v1026_v15 = vmul.f32 %v1582_v10, %v1010_v7  ;;  %1587 = vrsqrt.f32 %v981_v9  ;;  %v919_v38 = vmul.f32 0.0078125, %v901_v11  ;;  %v838_v19 = vpop.xlane.xlu0 %837 }
 0x31a   : > { %1087 = vst [vmem:[%s2258_s14 + $0x38] sm:$0xff] %v1071_v18  ;;  %v966_v24 = vmax.f32 %v950_v14, 0.0  ;;  %v856_v53 = vmul.f32 0.0078125, %v838_v19 }
 0x31b   : > { %v1584_v57 = vpop.eup %1583  ;;  %v1049_v55 = vmul.f32 %v2239_v63, %v1026_v15  ;;  %v951_v52 = vsub.f32 %v919_v38, %v935_v17 }
 0x31c   : > { %v1027_v26 = vmul.f32 %v1584_v57, %v1011_v23  ;;  %v982_v44 = vadd.f32 1e-05, %v966_v24  ;;  %v840_v29 = vpop.xlane.xlu1 %839  ;;  %v936_v30 = vmul.f32 %v856_v53, %v856_v53  ;;  %v1016_v43 = vsub.f32 %v2214_v13, %v856_v53 }
 0x31d   : > { %v1072_v59 = vadd.f32 %v2249_v16, %v1049_v55  ;;  %v967_v32 = vmax.f32 %v951_v52, 0.0  ;;  %v857_v20 = vmul.f32 0.0078125, %v840_v29  ;;  %v903_v33 = vpop.xlane.xlu0 %902 }
 0x31e   : > { %v1050_v35 = vmul.f32 %v2239_v63, %v1027_v26  ;;  %1589 = vrsqrt.f32 %v982_v44  ;;  %v920_v62 = vmul.f32 0.0078125, %v903_v33 }
 0x31f   : > { %1088 = vst [vmem:[%s2258_s14 + $0x40] sm:$0xff] %v1072_v59  ;;  %v983_v2 = vadd.f32 1e-05, %v967_v32  ;;  %v937_v47 = vmul.f32 %v857_v20, %v857_v20  ;;  %v1017_v36 = vsub.f32 %v2218_v28, %v857_v20 }
 0x320   : > { %v1586_v37 = vpop.eup %1585  ;;  %v1073_v42 = vadd.f32 %v2249_v16, %v1050_v35  ;;  %v952_v3 = vsub.f32 %v920_v62, %v936_v30  ;;  %v905_v45 = vpop.xlane.xlu1 %904 }
 0x321   : > { %v1028_v46 = vmul.f32 %v1586_v37, %v1012_v34  ;;  %1591 = vrsqrt.f32 %v983_v2  ;;  %v921_v48 = vmul.f32 0.0078125, %v905_v45 }
 0x322   : > { %1089 = vst [vmem:[%s2258_s14 + $0x48] sm:$0xff] %v1073_v42  ;;  %v968_v21 = vmax.f32 %v952_v3, 0.0 }
 0x323   : > { %v1588_v56 = vpop.eup %1587  ;;  %v1051_v61 = vmul.f32 %v2239_v63, %v1028_v46  ;;  %v953_v54 = vsub.f32 %v921_v48, %v937_v47 }
 0x324   : > { %v1029_v58 = vmul.f32 %v1588_v56, %v1013_v50  ;;  %v984_v60 = vadd.f32 1e-05, %v968_v21 }
 0x325   : > { %v1074_v22 = vadd.f32 %v2249_v16, %v1051_v61  ;;  %v969_v27 = vmax.f32 %v953_v54, 0.0 }
 0x326   : > { %v1052_v40 = vmul.f32 %v2239_v63, %v1029_v58  ;;  %1593 = vrsqrt.f32 %v984_v60 }
 0x327   : > { %1090 = vst [vmem:[%s2258_s14 + $0x50] sm:$0xff] %v1074_v22  ;;  %v985_v51 = vadd.f32 1e-05, %v969_v27 }
 0x328   : > { %v1590_v49 = vpop.eup %1589  ;;  %v1075_v0 = vadd.f32 %v2249_v16, %v1052_v40 }
 0x329   : > { %v1030_v1 = vmul.f32 %v1590_v49, %v1014_v39  ;;  %1595 = vrsqrt.f32 %v985_v51 }
 0x32a   : > { %1091 = vst [vmem:[%s2258_s14 + $0x58] sm:$0xff] %v1075_v0 }
 0x32b   : > { %v1592_v25 = vpop.eup %1591  ;;  %v1053_v5 = vmul.f32 %v2239_v63, %v1030_v1 }
 0x32c   : > { %v1031_v6 = vmul.f32 %v1592_v25, %v1015_v41 }
 0x32d   : > { %v1076_v12 = vadd.f32 %v2249_v16, %v1053_v5 }
 0x32e   : > { %v1054_v4 = vmul.f32 %v2239_v63, %v1031_v6 }
 0x32f   : > { %1092 = vst [vmem:[%s2258_s14 + $0x60] sm:$0xff] %v1076_v12 }
 0x330   : > { %v1594_v31 = vpop.eup %1593  ;;  %v1077_v7 = vadd.f32 %v2249_v16, %v1054_v4 }
 0x331   : > { %v1032_v8 = vmul.f32 %v1594_v31, %v1016_v43 }
 0x332   : > { %1093 = vst [vmem:[%s2258_s14 + $0x68] sm:$0xff] %v1077_v7 }
 0x333   : > { %v1596_v9 = vpop.eup %1595  ;;  %v1055_v10 = vmul.f32 %v2239_v63, %v1032_v8 }
 0x334   : > { %v1033_v18 = vmul.f32 %v1596_v9, %v1017_v36 }
 0x335   : > { %v1078_v14 = vadd.f32 %v2249_v16, %v1055_v10 }
 0x336   : > { %v1056_v13 = vmul.f32 %v2239_v63, %v1033_v18 }
 0x337   : > { %1094 = vst [vmem:[%s2258_s14 + $0x70] sm:$0xff] %v1078_v14 }
 0x338   : > { %v1079_v28 = vadd.f32 %v2249_v16, %v1056_v13 }
 0x33a   : > { %1095 = vst [vmem:[%s2258_s14 + $0x78] sm:$0xff] %v1079_v28 }
 0x33b   : > { %1696 = shalt.err (!%p1693_p2)
}
 0x33c   : > { %s1697_s15 = scalar_lea.hbm %s2365_s9, 2048  ;;  %s1701_s14 = scalar_lea.hbm %s2420_s7, 4096 }
 0x33d   : > { %p1698_p13 = scmp.ne.s32.totalorder %s2365_s9, %s1697_s15  ;;  %p1702_p4 = scmp.lt.u32.totalorder %s2365_s9, %s2420_s7 }
 0x33e   : > { %p1703_p5 = scmp.lt.u32.totalorder %s1701_s14, %s1697_s15  ;;  %p1705_p11 = scmp.lt.u32.totalorder %s1697_s15, %s2365_s9 }
 0x33f   : > { %p1699_p6 = pnand %p1698_p13, %p2434_p0 }
 0x340   : > { %p1704_p8 = por %p1703_p5, %p1702_p4 }
 0x341   : > { %p1700_p10 = pneg %p1699_p6 }
 0x342   : > { %p1706_p1 = por %p1705_p11, %p1704_p8 }
 0x344   : > { %p1707_p3 = pnand %p1706_p1, %p1700_p10 }
 0x346   : > { %1710 = shalt.err (!%p1707_p3)
}
 0x347   : > { %s1763_s30 = smov 128   ;;  %s1764_s20 = smov 8  }
 0x348   : > { %1470 = dma.vmem_to_hbm [thread:$0]  (%p2434_p0), %s2367_s18, 2048, %s2365_s9, %s1097_s28, %s1763_s30, %s1763_s30, %s1764_s20  }
 0x349 PF: > { %s1125_s11 = sand.u32 1, %s1741_s24   ;;  %p2435_p7 = scmp.ne.s32.totalorder %s2425_s8, 0 }
 0x34a   : > { %p2436_p9 = scmp.ge.s32.totalorder %s1753_s27, 2  ;;  %s1126_s22 = scalar_lea.sflag [#allocation4], %s1125_s11 }
 0x34c   : > { %p1484_p12 = pnand %p2436_p9, %p2435_p7 }
 0x34e   : > { %1736 = dma.done.wait (!%p1484_p12), %s1126_s22, 2048  }
 0x34f   : > { %1738 = vsyncadd (!%p1484_p12), %s1126_s22, 4294965248  ;;  %p21_p2 = scmp.ge.s32.totalorder %s1915_s13, 4   ;;  %s2437_s24 = smov %s1745_s25 }
 0x350   : > { %s2438_s25 = smov %s1749_s26  ;;  %s2439_s26 = smov %s1931_s17 }
 0x351   : > { %s2440_s27 = smov %s1915_s13  ;;  %23 = sbr.rel (!%p21_p2) target bundleno = 6 (0x6), region = 101 }
 0x358   :  { %1131 = vsyncpa [#allocation3], 1 }
 0x359   :  { %1133 = vsyncpa [#allocation3 + $0x1], 1 }
 0x35a   :  { %1134 = vsyncpa [#allocation6], 1 }
 0x35b   :  { %1135 = vsyncpa [#allocation4], 1 }
 0x35c   :  { %1137 = vsyncpa [#allocation4 + $0x1], 1 }

</bundles_post_ra>
